<compile_context>
chip_gen: v6e
topology: v6e:2x2x1
jax: 0.10.0
libtpu: 0.0.40
codegen_flags: <defaults>
</compile_context>

<pallas_src>
import functools

import jax
import jax.numpy as jnp
import numpy as np
from jax.experimental import pallas as pl
from jax.experimental.pallas import tpu as pltpu


def model_kernel(x_ref,        # (1, T*tb, F)   per-tile input, time-major rows t*tb+b (bf16)
                 w_ih_ref,     # (F, 4H)        LSTM input weights, transposed (bf16)
                 w_hh_ref,     # (H, 4H)        LSTM recurrent weights, transposed (bf16)
                 b_lstm_ref,   # (1, 4H)        b_ih + b_hh (f32)
                 w_fc1_ref,    # (T, H, H)      fc1 weight, transposed & split per step (bf16)
                 b_fc1_ref,    # (1, H)         (f32)
                 w_dnn_ref,    # (L-1, H, H)    hidden dnn linears, transposed (bf16)
                 b_dnn_ref,    # (L-1, 1, H)    (f32)
                 w_out_ref,    # (H, Op)        final linear, zero-padded to lane-dense Op (bf16)
                 b_out_ref,    # (1, Op)        (f32)
                 o_ref,        # (1, tb, Op)    output tile (f32)
                 *, seq_len, tile_batch):
    T, tb = seq_len, tile_batch
    H = w_hh_ref.shape[0]
    bf16 = jnp.bfloat16

    # --- Hoisted input projection: one well-shaped matmul, off the serial chain.
    #     Stored bf16 (bias added per step) to halve the live footprint.
    x2d = x_ref[0]                                                  # (T*tb, F) bf16
    gates_x = jnp.dot(x2d, w_ih_ref[...],
                      preferred_element_type=jnp.float32).astype(bf16)  # (T*tb, 4H)

    w_hh = w_hh_ref[...]                                            # (H, 4H) bf16, resident
    b_lstm = b_lstm_ref[...]                                        # (1, 4H) f32

    h = jnp.zeros((tb, H), jnp.float32)
    c = jnp.zeros((tb, H), jnp.float32)
    fc1_acc = jnp.zeros((tb, H), jnp.float32)

    # --- Statically-unrolled recurrence: only h @ W_hh is serially dependent.
    #     fc1 partial products ride under the MXU slack of that chain.
    for t in range(T):
        gx = gates_x[t * tb:(t + 1) * tb, :].astype(jnp.float32)    # sublane-aligned slice
        gates = gx + jnp.dot(h.astype(bf16), w_hh,
                             preferred_element_type=jnp.float32) + b_lstm
        sg = jax.nn.sigmoid(gates)                                  # one EUP pass (i, f, o lanes)
        i = sg[:, 0 * H:1 * H]
        f = sg[:, 1 * H:2 * H]
        o = sg[:, 3 * H:4 * H]
        g = jnp.tanh(gates[:, 2 * H:3 * H])
        c = f * c + i * g
        h = o * jnp.tanh(c)
        fc1_acc = fc1_acc + jnp.dot(h.astype(bf16), w_fc1_ref[t],
                                    preferred_element_type=jnp.float32)

    v = fc1_acc + b_fc1_ref[...]                                    # (tb, H)
    # dropout(p) in eval mode == identity

    # --- Deep MLP, statically unrolled.
    n_hidden_layers = w_dnn_ref.shape[0]
    for l in range(n_hidden_layers):
        v = jnp.maximum(v, 0.0)                                     # ReLU
        v = (jnp.dot(v.astype(bf16), w_dnn_ref[l],
                     preferred_element_type=jnp.float32)
             + b_dnn_ref[l])

    v = jnp.maximum(v, 0.0)                                         # final ReLU
    # Lane-dense final projection (Op >= 128 columns; extra columns are zero).
    o_ref[0] = (jnp.dot(v.astype(bf16), w_out_ref[...],
                        preferred_element_type=jnp.float32)
                + b_out_ref[...])


def make_params(key, n_features, n_hidden, n_outputs, sequence_len, n_deep_layers):
    """Deterministic PyTorch-style uniform init, already laid out for the kernel (f32)."""
    H, F, T, O, L = n_hidden, n_features, sequence_len, n_outputs, n_deep_layers
    ks = jax.random.split(key, 12)
    u = lambda k, shape, bound: jax.random.uniform(
        k, shape, jnp.float32, minval=-bound, maxval=bound)

    k_lstm = 1.0 / np.sqrt(H)
    w_ih = u(ks[0], (4 * H, F), k_lstm).T                 # -> (F, 4H)
    w_hh = u(ks[1], (4 * H, H), k_lstm).T                 # -> (H, 4H)
    b_lstm = (u(ks[2], (4 * H,), k_lstm)
              + u(ks[3], (4 * H,), k_lstm)).reshape(1, 4 * H)

    k_fc1 = 1.0 / np.sqrt(H * T)
    w_fc1 = u(ks[4], (H, H * T), k_fc1).T                 # (T*H, H), row index = t*H + h
    b_fc1 = u(ks[5], (H,), k_fc1).reshape(1, H)

    k_h = 1.0 / np.sqrt(H)
    w_dnn = jnp.stack([u(k, (H, H), k_h).T for k in jax.random.split(ks[6], L - 1)])
    b_dnn = jnp.stack([u(k, (H,), k_h).reshape(1, H)
                       for k in jax.random.split(ks[7], L - 1)])
    w_out = u(ks[8], (O, H), k_h).T                       # (H, O)
    b_out = u(ks[9], (O,), k_h).reshape(1, O)

    return (w_ih, w_hh, b_lstm, w_fc1, b_fc1, w_dnn, b_dnn, w_out, b_out)


@jax.jit
def model_forward(x_btf, params):
    """x_btf: (B, T, F) batch-first, like the PyTorch module."""
    w_ih, w_hh, b_lstm, w_fc1, b_fc1, w_dnn, b_dnn, w_out, b_out = params
    B, T, F = x_btf.shape
    H = w_hh.shape[0]
    O = w_out.shape[1]

    # --- Batch tiling: tb rows per grid step (sublane multiple); parallel grid over tiles.
    tb = min(128, ((B + 7) // 8) * 8)
    nb = -(-B // tb)                     # cdiv
    Bp = nb * tb

    # Pad/stage directly in bf16, no f32 intermediate.
    # (Bp, T, F) -> (nb, tb, T, F) -> (nb, T, tb, F) -> (nb, T*tb, F); row = t*tb + b_local.
    x_pad = jnp.pad(x_btf.astype(jnp.bfloat16), ((0, Bp - B), (0, 0), (0, 0)))
    x_tiled = x_pad.reshape(nb, tb, T, F).transpose(0, 2, 1, 3).reshape(nb, T * tb, F)

    # Lane-dense final projection: pad output columns with zeros up to Op (>=128).
    Op = max(128, ((O + 127) // 128) * 128)
    w_out_p = jnp.zeros((H, Op), w_out.dtype).at[:, :O].set(w_out)
    b_out_p = jnp.zeros((1, Op), b_out.dtype).at[:, :O].set(b_out)

    # fc1 weight split per time step so it can be accumulated inside the recurrence.
    w_fc1_3d = w_fc1.reshape(T, H, H)

    bf = lambda w: w.astype(jnp.bfloat16)   # MXU operands in bf16, biases stay f32
    kernel_args = (x_tiled, bf(w_ih), bf(w_hh), b_lstm, bf(w_fc1_3d), b_fc1,
                   bf(w_dnn), b_dnn, bf(w_out_p), b_out_p)

    # Weights: whole-array resident in VMEM (constant block across the grid).
    resident = pl.BlockSpec(memory_space=pltpu.MemorySpace.VMEM)
    in_specs = ([pl.BlockSpec((1, T * tb, F), lambda i: (i, 0, 0))]
                + [resident] * (len(kernel_args) - 1))
    out_spec = pl.BlockSpec((1, tb, Op), lambda i: (i, 0, 0))

    # VMEM budget derived from actual buffer sizes (gridded buffers double-buffered).
    nbytes = lambda a: int(np.prod(a.shape)) * a.dtype.itemsize
    resident_bytes = sum(nbytes(a) for a in kernel_args[1:])
    tile_bytes = T * tb * F * 2 + tb * Op * 4
    needed = resident_bytes + 2 * tile_bytes + (4 << 20)   # + headroom for intermediates
    vmem_limit = int(min(max(needed, 16 << 20), 64 << 20))

    out = pl.pallas_call(
        functools.partial(model_kernel, seq_len=T, tile_batch=tb),
        out_shape=jax.ShapeDtypeStruct((nb, tb, Op), jnp.float32),
        grid=(nb,),
        in_specs=in_specs,
        out_specs=out_spec,
        compiler_params=pltpu.CompilerParams(
            dimension_semantics=("parallel",),
            vmem_limit_bytes=vmem_limit),
    )(*kernel_args)
    return out.reshape(Bp, Op)[:B, :O]


def reference_forward(x_btf, params):
    """Pure-JAX reference mirroring the kernel math (bf16 operands, f32 accumulation)."""
    w_ih, w_hh, b_lstm, w_fc1, b_fc1, w_dnn, b_dnn, w_out, b_out = params
    bf = jnp.bfloat16
    x = x_btf.astype(bf)
    B, T, _ = x.shape
    H = w_hh.shape[0]
    w_ih_b, w_hh_b = w_ih.astype(bf), w_hh.astype(bf)
    w_fc1_3d = w_fc1.astype(bf).reshape(T, H, H)

    h = jnp.zeros((B, H), jnp.float32)
    c = jnp.zeros((B, H), jnp.float32)
    v = jnp.zeros((B, H), jnp.float32)
    for t in range(T):
        gx = jnp.dot(x[:, t, :], w_ih_b,
                     preferred_element_type=jnp.float32).astype(bf).astype(jnp.float32)
        gates = gx + jnp.dot(h.astype(bf), w_hh_b,
                             preferred_element_type=jnp.float32) + b_lstm
        i = jax.nn.sigmoid(gates[:, :H])
        f = jax.nn.sigmoid(gates[:, H:2 * H])
        g = jnp.tanh(gates[:, 2 * H:3 * H])
        o = jax.nn.sigmoid(gates[:, 3 * H:])
        c = f * c + i * g
        h = o * jnp.tanh(c)
        v = v + jnp.dot(h.astype(bf), w_fc1_3d[t], preferred_element_type=jnp.float32)
    v = v + b_fc1
    for l in range(w_dnn.shape[0]):
        v = jnp.maximum(v, 0.0)
        v = (jnp.dot(v.astype(bf), w_dnn[l].astype(bf),
                     preferred_element_type=jnp.float32) + b_dnn[l])
    v = jnp.maximum(v, 0.0)
    return (jnp.dot(v.astype(bf), w_out.astype(bf),
                    preferred_element_type=jnp.float32) + b_out)


if __name__ == "__main__":
    # Small, module-consistent shapes.
    B, T, F, H, O, L = 2, 8, 4, 32, 1, 3   # batch, seq_len, n_features, n_hidden, n_outputs, n_deep_layers

    key = jax.random.PRNGKey(0)
    kx, kp = jax.random.split(key)
    x = jax.random.normal(kx, (B, T, F), dtype=jnp.float32)        # batch-first input, like PyTorch
    params = make_params(kp, F, H, O, T, L)

    out = model_forward(x, params)
    out = jax.block_until_ready(out)

    ref = reference_forward(x, params)
    np.testing.assert_allclose(np.asarray(out), np.asarray(ref), rtol=1e-2, atol=1e-2)

    assert out.shape == (B, O)
    print("KERNEL_OK")
</pallas_src>

<mosaic_0001>
module attributes {stable_mosaic.version = 11 : i64} {
  func.func @model_kernel(%arg0: i32, %arg1: memref<1x64x4xbf16, #tpu.memory_space<vmem>>, %arg2: memref<4x128xbf16, #tpu.memory_space<vmem>>, %arg3: memref<32x128xbf16, #tpu.memory_space<vmem>>, %arg4: memref<1x128xf32, #tpu.memory_space<vmem>>, %arg5: memref<8x32x32xbf16, #tpu.memory_space<vmem>>, %arg6: memref<1x32xf32, #tpu.memory_space<vmem>>, %arg7: memref<2x32x32xbf16, #tpu.memory_space<vmem>>, %arg8: memref<2x1x32xf32, #tpu.memory_space<vmem>>, %arg9: memref<32x128xbf16, #tpu.memory_space<vmem>>, %arg10: memref<1x128xf32, #tpu.memory_space<vmem>>, %arg11: memref<1x8x128xf32, #tpu.memory_space<vmem>>) attributes {dimension_semantics = [#tpu.dimension_semantics<parallel>], iteration_bounds = array<i64: 1>, scalar_prefetch = 0 : i64, scratch_operands = 0 : i64, tpu.core_type = #tpu.core_type<tc>, window_params = [{transform_indices = @transform_0, window_bounds = array<i64: 1, 64, 4>}, {pipeline_mode = #tpu.pipeline_mode<synchronous>, transform_indices = @transform_1, window_bounds = array<i64: 4, 128>}, {pipeline_mode = #tpu.pipeline_mode<synchronous>, transform_indices = @transform_2, window_bounds = array<i64: 32, 128>}, {pipeline_mode = #tpu.pipeline_mode<synchronous>, transform_indices = @transform_3, window_bounds = array<i64: 1, 128>}, {pipeline_mode = #tpu.pipeline_mode<synchronous>, transform_indices = @transform_4, window_bounds = array<i64: 8, 32, 32>}, {pipeline_mode = #tpu.pipeline_mode<synchronous>, transform_indices = @transform_5, window_bounds = array<i64: 1, 32>}, {pipeline_mode = #tpu.pipeline_mode<synchronous>, transform_indices = @transform_6, window_bounds = array<i64: 2, 32, 32>}, {pipeline_mode = #tpu.pipeline_mode<synchronous>, transform_indices = @transform_7, window_bounds = array<i64: 2, 1, 32>}, {pipeline_mode = #tpu.pipeline_mode<synchronous>, transform_indices = @transform_8, window_bounds = array<i64: 32, 128>}, {pipeline_mode = #tpu.pipeline_mode<synchronous>, transform_indices = @transform_9, window_bounds = array<i64: 1, 128>}, {transform_indices = @transform_10, window_bounds = array<i64: 1, 8, 128>}]} {
    %c0 = arith.constant 0 : index
    %c0_0 = arith.constant 0 : index
    %c0_1 = arith.constant 0 : index
    %0 = vector.load %arg1[%c0, %c0_0, %c0_1] : memref<1x64x4xbf16, #tpu.memory_space<vmem>>, vector<1x64x4xbf16>
    %1 = vector.shape_cast %0 : vector<1x64x4xbf16> to vector<64x4xbf16>
    %c0_2 = arith.constant 0 : index
    %c0_3 = arith.constant 0 : index
    %2 = vector.load %arg2[%c0_2, %c0_3] : memref<4x128xbf16, #tpu.memory_space<vmem>>, vector<4x128xbf16>
    %cst = arith.constant dense<0.000000e+00> : vector<64x128xf32>
    %3 = tpu.matmul %1, %2, %cst {dimension_numbers = #tpu.dot_dimension_numbers<[1], [0], [0], [1], [0, 0, 1, 1], [], []>} : vector<64x4xbf16>, vector<4x128xbf16>, vector<64x128xf32> -> vector<64x128xf32>
    %4 = arith.truncf %3 : vector<64x128xf32> to vector<64x128xbf16>
    %c0_4 = arith.constant 0 : index
    %c0_5 = arith.constant 0 : index
    %5 = vector.load %arg3[%c0_4, %c0_5] : memref<32x128xbf16, #tpu.memory_space<vmem>>, vector<32x128xbf16>
    %c0_6 = arith.constant 0 : index
    %c0_7 = arith.constant 0 : index
    %6 = vector.load %arg4[%c0_6, %c0_7] : memref<1x128xf32, #tpu.memory_space<vmem>>, vector<1x128xf32>
    %cst_8 = arith.constant 0.000000e+00 : f32
    %7 = vector.broadcast %cst_8 : f32 to vector<8x32xf32>
    %cst_9 = arith.constant 0.000000e+00 : f32
    %8 = vector.broadcast %cst_9 : f32 to vector<8x32xf32>
    %cst_10 = arith.constant 0.000000e+00 : f32
    %9 = vector.broadcast %cst_10 : f32 to vector<8x32xf32>
    %10 = vector.extract_strided_slice %4 {offsets = [0, 0], sizes = [8, 128], strides = [1, 1]} : vector<64x128xbf16> to vector<8x128xbf16>
    %11 = arith.extf %10 : vector<8x128xbf16> to vector<8x128xf32>
    %12 = arith.truncf %7 : vector<8x32xf32> to vector<8x32xbf16>
    %cst_11 = arith.constant dense<0.000000e+00> : vector<8x128xf32>
    %13 = tpu.matmul %12, %5, %cst_11 {dimension_numbers = #tpu.dot_dimension_numbers<[1], [0], [0], [1], [0, 0, 1, 1], [], []>} : vector<8x32xbf16>, vector<32x128xbf16>, vector<8x128xf32> -> vector<8x128xf32>
    %14 = arith.addf %11, %13 : vector<8x128xf32>
    %15 = vector.broadcast %6 : vector<1x128xf32> to vector<8x128xf32>
    %16 = arith.addf %14, %15 : vector<8x128xf32>
    %17 = arith.negf %16 : vector<8x128xf32>
    %18 = math.exp %17 : vector<8x128xf32>
    %cst_12 = arith.constant 1.000000e+00 : f32
    %19 = vector.broadcast %cst_12 : f32 to vector<8x128xf32>
    %20 = arith.addf %19, %18 : vector<8x128xf32>
    %21 = arith.divf %19, %20 : vector<8x128xf32>
    %22 = vector.extract_strided_slice %21 {offsets = [0, 0], sizes = [8, 32], strides = [1, 1]} : vector<8x128xf32> to vector<8x32xf32>
    %23 = vector.extract_strided_slice %21 {offsets = [0, 32], sizes = [8, 32], strides = [1, 1]} : vector<8x128xf32> to vector<8x32xf32>
    %24 = vector.extract_strided_slice %21 {offsets = [0, 96], sizes = [8, 32], strides = [1, 1]} : vector<8x128xf32> to vector<8x32xf32>
    %25 = vector.extract_strided_slice %16 {offsets = [0, 64], sizes = [8, 32], strides = [1, 1]} : vector<8x128xf32> to vector<8x32xf32>
    %26 = math.tanh %25 : vector<8x32xf32>
    %27 = arith.mulf %23, %8 : vector<8x32xf32>
    %28 = arith.mulf %22, %26 : vector<8x32xf32>
    %29 = arith.addf %27, %28 : vector<8x32xf32>
    %30 = math.tanh %29 : vector<8x32xf32>
    %31 = arith.mulf %24, %30 : vector<8x32xf32>
    %32 = arith.truncf %31 : vector<8x32xf32> to vector<8x32xbf16>
    %c0_13 = arith.constant 0 : index
    %c0_14 = arith.constant 0 : index
    %c0_15 = arith.constant 0 : index
    %33 = vector.load %arg5[%c0_13, %c0_14, %c0_15] : memref<8x32x32xbf16, #tpu.memory_space<vmem>>, vector<1x32x32xbf16>
    %34 = vector.shape_cast %33 : vector<1x32x32xbf16> to vector<32x32xbf16>
    %cst_16 = arith.constant dense<0.000000e+00> : vector<8x32xf32>
    %35 = tpu.matmul %32, %34, %cst_16 {dimension_numbers = #tpu.dot_dimension_numbers<[1], [0], [0], [1], [0, 0, 1, 1], [], []>} : vector<8x32xbf16>, vector<32x32xbf16>, vector<8x32xf32> -> vector<8x32xf32>
    %36 = arith.addf %9, %35 : vector<8x32xf32>
    %37 = vector.extract_strided_slice %4 {offsets = [8, 0], sizes = [8, 128], strides = [1, 1]} : vector<64x128xbf16> to vector<8x128xbf16>
    %38 = arith.extf %37 : vector<8x128xbf16> to vector<8x128xf32>
    %39 = arith.truncf %31 : vector<8x32xf32> to vector<8x32xbf16>
    %cst_17 = arith.constant dense<0.000000e+00> : vector<8x128xf32>
    %40 = tpu.matmul %39, %5, %cst_17 {dimension_numbers = #tpu.dot_dimension_numbers<[1], [0], [0], [1], [0, 0, 1, 1], [], []>} : vector<8x32xbf16>, vector<32x128xbf16>, vector<8x128xf32> -> vector<8x128xf32>
    %41 = arith.addf %38, %40 : vector<8x128xf32>
    %42 = vector.broadcast %6 : vector<1x128xf32> to vector<8x128xf32>
    %43 = arith.addf %41, %42 : vector<8x128xf32>
    %44 = arith.negf %43 : vector<8x128xf32>
    %45 = math.exp %44 : vector<8x128xf32>
    %cst_18 = arith.constant 1.000000e+00 : f32
    %46 = vector.broadcast %cst_18 : f32 to vector<8x128xf32>
    %47 = arith.addf %46, %45 : vector<8x128xf32>
    %48 = arith.divf %46, %47 : vector<8x128xf32>
    %49 = vector.extract_strided_slice %48 {offsets = [0, 0], sizes = [8, 32], strides = [1, 1]} : vector<8x128xf32> to vector<8x32xf32>
    %50 = vector.extract_strided_slice %48 {offsets = [0, 32], sizes = [8, 32], strides = [1, 1]} : vector<8x128xf32> to vector<8x32xf32>
    %51 = vector.extract_strided_slice %48 {offsets = [0, 96], sizes = [8, 32], strides = [1, 1]} : vector<8x128xf32> to vector<8x32xf32>
    %52 = vector.extract_strided_slice %43 {offsets = [0, 64], sizes = [8, 32], strides = [1, 1]} : vector<8x128xf32> to vector<8x32xf32>
    %53 = math.tanh %52 : vector<8x32xf32>
    %54 = arith.mulf %50, %29 : vector<8x32xf32>
    %55 = arith.mulf %49, %53 : vector<8x32xf32>
    %56 = arith.addf %54, %55 : vector<8x32xf32>
    %57 = math.tanh %56 : vector<8x32xf32>
    %58 = arith.mulf %51, %57 : vector<8x32xf32>
    %59 = arith.truncf %58 : vector<8x32xf32> to vector<8x32xbf16>
    %c1 = arith.constant 1 : index
    %c0_19 = arith.constant 0 : index
    %c0_20 = arith.constant 0 : index
    %60 = vector.load %arg5[%c1, %c0_19, %c0_20] : memref<8x32x32xbf16, #tpu.memory_space<vmem>>, vector<1x32x32xbf16>
    %61 = vector.shape_cast %60 : vector<1x32x32xbf16> to vector<32x32xbf16>
    %cst_21 = arith.constant dense<0.000000e+00> : vector<8x32xf32>
    %62 = tpu.matmul %59, %61, %cst_21 {dimension_numbers = #tpu.dot_dimension_numbers<[1], [0], [0], [1], [0, 0, 1, 1], [], []>} : vector<8x32xbf16>, vector<32x32xbf16>, vector<8x32xf32> -> vector<8x32xf32>
    %63 = arith.addf %36, %62 : vector<8x32xf32>
    %64 = vector.extract_strided_slice %4 {offsets = [16, 0], sizes = [8, 128], strides = [1, 1]} : vector<64x128xbf16> to vector<8x128xbf16>
    %65 = arith.extf %64 : vector<8x128xbf16> to vector<8x128xf32>
    %66 = arith.truncf %58 : vector<8x32xf32> to vector<8x32xbf16>
    %cst_22 = arith.constant dense<0.000000e+00> : vector<8x128xf32>
    %67 = tpu.matmul %66, %5, %cst_22 {dimension_numbers = #tpu.dot_dimension_numbers<[1], [0], [0], [1], [0, 0, 1, 1], [], []>} : vector<8x32xbf16>, vector<32x128xbf16>, vector<8x128xf32> -> vector<8x128xf32>
    %68 = arith.addf %65, %67 : vector<8x128xf32>
    %69 = vector.broadcast %6 : vector<1x128xf32> to vector<8x128xf32>
    %70 = arith.addf %68, %69 : vector<8x128xf32>
    %71 = arith.negf %70 : vector<8x128xf32>
    %72 = math.exp %71 : vector<8x128xf32>
    %cst_23 = arith.constant 1.000000e+00 : f32
    %73 = vector.broadcast %cst_23 : f32 to vector<8x128xf32>
    %74 = arith.addf %73, %72 : vector<8x128xf32>
    %75 = arith.divf %73, %74 : vector<8x128xf32>
    %76 = vector.extract_strided_slice %75 {offsets = [0, 0], sizes = [8, 32], strides = [1, 1]} : vector<8x128xf32> to vector<8x32xf32>
    %77 = vector.extract_strided_slice %75 {offsets = [0, 32], sizes = [8, 32], strides = [1, 1]} : vector<8x128xf32> to vector<8x32xf32>
    %78 = vector.extract_strided_slice %75 {offsets = [0, 96], sizes = [8, 32], strides = [1, 1]} : vector<8x128xf32> to vector<8x32xf32>
    %79 = vector.extract_strided_slice %70 {offsets = [0, 64], sizes = [8, 32], strides = [1, 1]} : vector<8x128xf32> to vector<8x32xf32>
    %80 = math.tanh %79 : vector<8x32xf32>
    %81 = arith.mulf %77, %56 : vector<8x32xf32>
    %82 = arith.mulf %76, %80 : vector<8x32xf32>
    %83 = arith.addf %81, %82 : vector<8x32xf32>
    %84 = math.tanh %83 : vector<8x32xf32>
    %85 = arith.mulf %78, %84 : vector<8x32xf32>
    %86 = arith.truncf %85 : vector<8x32xf32> to vector<8x32xbf16>
    %c2 = arith.constant 2 : index
    %c0_24 = arith.constant 0 : index
    %c0_25 = arith.constant 0 : index
    %87 = vector.load %arg5[%c2, %c0_24, %c0_25] : memref<8x32x32xbf16, #tpu.memory_space<vmem>>, vector<1x32x32xbf16>
    %88 = vector.shape_cast %87 : vector<1x32x32xbf16> to vector<32x32xbf16>
    %cst_26 = arith.constant dense<0.000000e+00> : vector<8x32xf32>
    %89 = tpu.matmul %86, %88, %cst_26 {dimension_numbers = #tpu.dot_dimension_numbers<[1], [0], [0], [1], [0, 0, 1, 1], [], []>} : vector<8x32xbf16>, vector<32x32xbf16>, vector<8x32xf32> -> vector<8x32xf32>
    %90 = arith.addf %63, %89 : vector<8x32xf32>
    %91 = vector.extract_strided_slice %4 {offsets = [24, 0], sizes = [8, 128], strides = [1, 1]} : vector<64x128xbf16> to vector<8x128xbf16>
    %92 = arith.extf %91 : vector<8x128xbf16> to vector<8x128xf32>
    %93 = arith.truncf %85 : vector<8x32xf32> to vector<8x32xbf16>
    %cst_27 = arith.constant dense<0.000000e+00> : vector<8x128xf32>
    %94 = tpu.matmul %93, %5, %cst_27 {dimension_numbers = #tpu.dot_dimension_numbers<[1], [0], [0], [1], [0, 0, 1, 1], [], []>} : vector<8x32xbf16>, vector<32x128xbf16>, vector<8x128xf32> -> vector<8x128xf32>
    %95 = arith.addf %92, %94 : vector<8x128xf32>
    %96 = vector.broadcast %6 : vector<1x128xf32> to vector<8x128xf32>
    %97 = arith.addf %95, %96 : vector<8x128xf32>
    %98 = arith.negf %97 : vector<8x128xf32>
    %99 = math.exp %98 : vector<8x128xf32>
    %cst_28 = arith.constant 1.000000e+00 : f32
    %100 = vector.broadcast %cst_28 : f32 to vector<8x128xf32>
    %101 = arith.addf %100, %99 : vector<8x128xf32>
    %102 = arith.divf %100, %101 : vector<8x128xf32>
    %103 = vector.extract_strided_slice %102 {offsets = [0, 0], sizes = [8, 32], strides = [1, 1]} : vector<8x128xf32> to vector<8x32xf32>
    %104 = vector.extract_strided_slice %102 {offsets = [0, 32], sizes = [8, 32], strides = [1, 1]} : vector<8x128xf32> to vector<8x32xf32>
    %105 = vector.extract_strided_slice %102 {offsets = [0, 96], sizes = [8, 32], strides = [1, 1]} : vector<8x128xf32> to vector<8x32xf32>
    %106 = vector.extract_strided_slice %97 {offsets = [0, 64], sizes = [8, 32], strides = [1, 1]} : vector<8x128xf32> to vector<8x32xf32>
    %107 = math.tanh %106 : vector<8x32xf32>
    %108 = arith.mulf %104, %83 : vector<8x32xf32>
    %109 = arith.mulf %103, %107 : vector<8x32xf32>
    %110 = arith.addf %108, %109 : vector<8x32xf32>
    %111 = math.tanh %110 : vector<8x32xf32>
    %112 = arith.mulf %105, %111 : vector<8x32xf32>
    %113 = arith.truncf %112 : vector<8x32xf32> to vector<8x32xbf16>
    %c3 = arith.constant 3 : index
    %c0_29 = arith.constant 0 : index
    %c0_30 = arith.constant 0 : index
    %114 = vector.load %arg5[%c3, %c0_29, %c0_30] : memref<8x32x32xbf16, #tpu.memory_space<vmem>>, vector<1x32x32xbf16>
    %115 = vector.shape_cast %114 : vector<1x32x32xbf16> to vector<32x32xbf16>
    %cst_31 = arith.constant dense<0.000000e+00> : vector<8x32xf32>
    %116 = tpu.matmul %113, %115, %cst_31 {dimension_numbers = #tpu.dot_dimension_numbers<[1], [0], [0], [1], [0, 0, 1, 1], [], []>} : vector<8x32xbf16>, vector<32x32xbf16>, vector<8x32xf32> -> vector<8x32xf32>
    %117 = arith.addf %90, %116 : vector<8x32xf32>
    %118 = vector.extract_strided_slice %4 {offsets = [32, 0], sizes = [8, 128], strides = [1, 1]} : vector<64x128xbf16> to vector<8x128xbf16>
    %119 = arith.extf %118 : vector<8x128xbf16> to vector<8x128xf32>
    %120 = arith.truncf %112 : vector<8x32xf32> to vector<8x32xbf16>
    %cst_32 = arith.constant dense<0.000000e+00> : vector<8x128xf32>
    %121 = tpu.matmul %120, %5, %cst_32 {dimension_numbers = #tpu.dot_dimension_numbers<[1], [0], [0], [1], [0, 0, 1, 1], [], []>} : vector<8x32xbf16>, vector<32x128xbf16>, vector<8x128xf32> -> vector<8x128xf32>
    %122 = arith.addf %119, %121 : vector<8x128xf32>
    %123 = vector.broadcast %6 : vector<1x128xf32> to vector<8x128xf32>
    %124 = arith.addf %122, %123 : vector<8x128xf32>
    %125 = arith.negf %124 : vector<8x128xf32>
    %126 = math.exp %125 : vector<8x128xf32>
    %cst_33 = arith.constant 1.000000e+00 : f32
    %127 = vector.broadcast %cst_33 : f32 to vector<8x128xf32>
    %128 = arith.addf %127, %126 : vector<8x128xf32>
    %129 = arith.divf %127, %128 : vector<8x128xf32>
    %130 = vector.extract_strided_slice %129 {offsets = [0, 0], sizes = [8, 32], strides = [1, 1]} : vector<8x128xf32> to vector<8x32xf32>
    %131 = vector.extract_strided_slice %129 {offsets = [0, 32], sizes = [8, 32], strides = [1, 1]} : vector<8x128xf32> to vector<8x32xf32>
    %132 = vector.extract_strided_slice %129 {offsets = [0, 96], sizes = [8, 32], strides = [1, 1]} : vector<8x128xf32> to vector<8x32xf32>
    %133 = vector.extract_strided_slice %124 {offsets = [0, 64], sizes = [8, 32], strides = [1, 1]} : vector<8x128xf32> to vector<8x32xf32>
    %134 = math.tanh %133 : vector<8x32xf32>
    %135 = arith.mulf %131, %110 : vector<8x32xf32>
    %136 = arith.mulf %130, %134 : vector<8x32xf32>
    %137 = arith.addf %135, %136 : vector<8x32xf32>
    %138 = math.tanh %137 : vector<8x32xf32>
    %139 = arith.mulf %132, %138 : vector<8x32xf32>
    %140 = arith.truncf %139 : vector<8x32xf32> to vector<8x32xbf16>
    %c4 = arith.constant 4 : index
    %c0_34 = arith.constant 0 : index
    %c0_35 = arith.constant 0 : index
    %141 = vector.load %arg5[%c4, %c0_34, %c0_35] : memref<8x32x32xbf16, #tpu.memory_space<vmem>>, vector<1x32x32xbf16>
    %142 = vector.shape_cast %141 : vector<1x32x32xbf16> to vector<32x32xbf16>
    %cst_36 = arith.constant dense<0.000000e+00> : vector<8x32xf32>
    %143 = tpu.matmul %140, %142, %cst_36 {dimension_numbers = #tpu.dot_dimension_numbers<[1], [0], [0], [1], [0, 0, 1, 1], [], []>} : vector<8x32xbf16>, vector<32x32xbf16>, vector<8x32xf32> -> vector<8x32xf32>
    %144 = arith.addf %117, %143 : vector<8x32xf32>
    %145 = vector.extract_strided_slice %4 {offsets = [40, 0], sizes = [8, 128], strides = [1, 1]} : vector<64x128xbf16> to vector<8x128xbf16>
    %146 = arith.extf %145 : vector<8x128xbf16> to vector<8x128xf32>
    %147 = arith.truncf %139 : vector<8x32xf32> to vector<8x32xbf16>
    %cst_37 = arith.constant dense<0.000000e+00> : vector<8x128xf32>
    %148 = tpu.matmul %147, %5, %cst_37 {dimension_numbers = #tpu.dot_dimension_numbers<[1], [0], [0], [1], [0, 0, 1, 1], [], []>} : vector<8x32xbf16>, vector<32x128xbf16>, vector<8x128xf32> -> vector<8x128xf32>
    %149 = arith.addf %146, %148 : vector<8x128xf32>
    %150 = vector.broadcast %6 : vector<1x128xf32> to vector<8x128xf32>
    %151 = arith.addf %149, %150 : vector<8x128xf32>
    %152 = arith.negf %151 : vector<8x128xf32>
    %153 = math.exp %152 : vector<8x128xf32>
    %cst_38 = arith.constant 1.000000e+00 : f32
    %154 = vector.broadcast %cst_38 : f32 to vector<8x128xf32>
    %155 = arith.addf %154, %153 : vector<8x128xf32>
    %156 = arith.divf %154, %155 : vector<8x128xf32>
    %157 = vector.extract_strided_slice %156 {offsets = [0, 0], sizes = [8, 32], strides = [1, 1]} : vector<8x128xf32> to vector<8x32xf32>
    %158 = vector.extract_strided_slice %156 {offsets = [0, 32], sizes = [8, 32], strides = [1, 1]} : vector<8x128xf32> to vector<8x32xf32>
    %159 = vector.extract_strided_slice %156 {offsets = [0, 96], sizes = [8, 32], strides = [1, 1]} : vector<8x128xf32> to vector<8x32xf32>
    %160 = vector.extract_strided_slice %151 {offsets = [0, 64], sizes = [8, 32], strides = [1, 1]} : vector<8x128xf32> to vector<8x32xf32>
    %161 = math.tanh %160 : vector<8x32xf32>
    %162 = arith.mulf %158, %137 : vector<8x32xf32>
    %163 = arith.mulf %157, %161 : vector<8x32xf32>
    %164 = arith.addf %162, %163 : vector<8x32xf32>
    %165 = math.tanh %164 : vector<8x32xf32>
    %166 = arith.mulf %159, %165 : vector<8x32xf32>
    %167 = arith.truncf %166 : vector<8x32xf32> to vector<8x32xbf16>
    %c5 = arith.constant 5 : index
    %c0_39 = arith.constant 0 : index
    %c0_40 = arith.constant 0 : index
    %168 = vector.load %arg5[%c5, %c0_39, %c0_40] : memref<8x32x32xbf16, #tpu.memory_space<vmem>>, vector<1x32x32xbf16>
    %169 = vector.shape_cast %168 : vector<1x32x32xbf16> to vector<32x32xbf16>
    %cst_41 = arith.constant dense<0.000000e+00> : vector<8x32xf32>
    %170 = tpu.matmul %167, %169, %cst_41 {dimension_numbers = #tpu.dot_dimension_numbers<[1], [0], [0], [1], [0, 0, 1, 1], [], []>} : vector<8x32xbf16>, vector<32x32xbf16>, vector<8x32xf32> -> vector<8x32xf32>
    %171 = arith.addf %144, %170 : vector<8x32xf32>
    %172 = vector.extract_strided_slice %4 {offsets = [48, 0], sizes = [8, 128], strides = [1, 1]} : vector<64x128xbf16> to vector<8x128xbf16>
    %173 = arith.extf %172 : vector<8x128xbf16> to vector<8x128xf32>
    %174 = arith.truncf %166 : vector<8x32xf32> to vector<8x32xbf16>
    %cst_42 = arith.constant dense<0.000000e+00> : vector<8x128xf32>
    %175 = tpu.matmul %174, %5, %cst_42 {dimension_numbers = #tpu.dot_dimension_numbers<[1], [0], [0], [1], [0, 0, 1, 1], [], []>} : vector<8x32xbf16>, vector<32x128xbf16>, vector<8x128xf32> -> vector<8x128xf32>
    %176 = arith.addf %173, %175 : vector<8x128xf32>
    %177 = vector.broadcast %6 : vector<1x128xf32> to vector<8x128xf32>
    %178 = arith.addf %176, %177 : vector<8x128xf32>
    %179 = arith.negf %178 : vector<8x128xf32>
    %180 = math.exp %179 : vector<8x128xf32>
    %cst_43 = arith.constant 1.000000e+00 : f32
    %181 = vector.broadcast %cst_43 : f32 to vector<8x128xf32>
    %182 = arith.addf %181, %180 : vector<8x128xf32>
    %183 = arith.divf %181, %182 : vector<8x128xf32>
    %184 = vector.extract_strided_slice %183 {offsets = [0, 0], sizes = [8, 32], strides = [1, 1]} : vector<8x128xf32> to vector<8x32xf32>
    %185 = vector.extract_strided_slice %183 {offsets = [0, 32], sizes = [8, 32], strides = [1, 1]} : vector<8x128xf32> to vector<8x32xf32>
    %186 = vector.extract_strided_slice %183 {offsets = [0, 96], sizes = [8, 32], strides = [1, 1]} : vector<8x128xf32> to vector<8x32xf32>
    %187 = vector.extract_strided_slice %178 {offsets = [0, 64], sizes = [8, 32], strides = [1, 1]} : vector<8x128xf32> to vector<8x32xf32>
    %188 = math.tanh %187 : vector<8x32xf32>
    %189 = arith.mulf %185, %164 : vector<8x32xf32>
    %190 = arith.mulf %184, %188 : vector<8x32xf32>
    %191 = arith.addf %189, %190 : vector<8x32xf32>
    %192 = math.tanh %191 : vector<8x32xf32>
    %193 = arith.mulf %186, %192 : vector<8x32xf32>
    %194 = arith.truncf %193 : vector<8x32xf32> to vector<8x32xbf16>
    %c6 = arith.constant 6 : index
    %c0_44 = arith.constant 0 : index
    %c0_45 = arith.constant 0 : index
    %195 = vector.load %arg5[%c6, %c0_44, %c0_45] : memref<8x32x32xbf16, #tpu.memory_space<vmem>>, vector<1x32x32xbf16>
    %196 = vector.shape_cast %195 : vector<1x32x32xbf16> to vector<32x32xbf16>
    %cst_46 = arith.constant dense<0.000000e+00> : vector<8x32xf32>
    %197 = tpu.matmul %194, %196, %cst_46 {dimension_numbers = #tpu.dot_dimension_numbers<[1], [0], [0], [1], [0, 0, 1, 1], [], []>} : vector<8x32xbf16>, vector<32x32xbf16>, vector<8x32xf32> -> vector<8x32xf32>
    %198 = arith.addf %171, %197 : vector<8x32xf32>
    %199 = vector.extract_strided_slice %4 {offsets = [56, 0], sizes = [8, 128], strides = [1, 1]} : vector<64x128xbf16> to vector<8x128xbf16>
    %200 = arith.extf %199 : vector<8x128xbf16> to vector<8x128xf32>
    %201 = arith.truncf %193 : vector<8x32xf32> to vector<8x32xbf16>
    %cst_47 = arith.constant dense<0.000000e+00> : vector<8x128xf32>
    %202 = tpu.matmul %201, %5, %cst_47 {dimension_numbers = #tpu.dot_dimension_numbers<[1], [0], [0], [1], [0, 0, 1, 1], [], []>} : vector<8x32xbf16>, vector<32x128xbf16>, vector<8x128xf32> -> vector<8x128xf32>
    %203 = arith.addf %200, %202 : vector<8x128xf32>
    %204 = vector.broadcast %6 : vector<1x128xf32> to vector<8x128xf32>
    %205 = arith.addf %203, %204 : vector<8x128xf32>
    %206 = arith.negf %205 : vector<8x128xf32>
    %207 = math.exp %206 : vector<8x128xf32>
    %cst_48 = arith.constant 1.000000e+00 : f32
    %208 = vector.broadcast %cst_48 : f32 to vector<8x128xf32>
    %209 = arith.addf %208, %207 : vector<8x128xf32>
    %210 = arith.divf %208, %209 : vector<8x128xf32>
    %211 = vector.extract_strided_slice %210 {offsets = [0, 0], sizes = [8, 32], strides = [1, 1]} : vector<8x128xf32> to vector<8x32xf32>
    %212 = vector.extract_strided_slice %210 {offsets = [0, 32], sizes = [8, 32], strides = [1, 1]} : vector<8x128xf32> to vector<8x32xf32>
    %213 = vector.extract_strided_slice %210 {offsets = [0, 96], sizes = [8, 32], strides = [1, 1]} : vector<8x128xf32> to vector<8x32xf32>
    %214 = vector.extract_strided_slice %205 {offsets = [0, 64], sizes = [8, 32], strides = [1, 1]} : vector<8x128xf32> to vector<8x32xf32>
    %215 = math.tanh %214 : vector<8x32xf32>
    %216 = arith.mulf %212, %191 : vector<8x32xf32>
    %217 = arith.mulf %211, %215 : vector<8x32xf32>
    %218 = arith.addf %216, %217 : vector<8x32xf32>
    %219 = math.tanh %218 : vector<8x32xf32>
    %220 = arith.mulf %213, %219 : vector<8x32xf32>
    %221 = arith.truncf %220 : vector<8x32xf32> to vector<8x32xbf16>
    %c7 = arith.constant 7 : index
    %c0_49 = arith.constant 0 : index
    %c0_50 = arith.constant 0 : index
    %222 = vector.load %arg5[%c7, %c0_49, %c0_50] : memref<8x32x32xbf16, #tpu.memory_space<vmem>>, vector<1x32x32xbf16>
    %223 = vector.shape_cast %222 : vector<1x32x32xbf16> to vector<32x32xbf16>
    %cst_51 = arith.constant dense<0.000000e+00> : vector<8x32xf32>
    %224 = tpu.matmul %221, %223, %cst_51 {dimension_numbers = #tpu.dot_dimension_numbers<[1], [0], [0], [1], [0, 0, 1, 1], [], []>} : vector<8x32xbf16>, vector<32x32xbf16>, vector<8x32xf32> -> vector<8x32xf32>
    %225 = arith.addf %198, %224 : vector<8x32xf32>
    %c0_52 = arith.constant 0 : index
    %c0_53 = arith.constant 0 : index
    %226 = vector.load %arg6[%c0_52, %c0_53] : memref<1x32xf32, #tpu.memory_space<vmem>>, vector<1x32xf32>
    %227 = vector.broadcast %226 : vector<1x32xf32> to vector<8x32xf32>
    %228 = arith.addf %225, %227 : vector<8x32xf32>
    %cst_54 = arith.constant 0.000000e+00 : f32
    %229 = vector.broadcast %cst_54 : f32 to vector<8x32xf32>
    %230 = arith.maximumf %228, %229 : vector<8x32xf32>
    %231 = arith.truncf %230 : vector<8x32xf32> to vector<8x32xbf16>
    %c0_55 = arith.constant 0 : index
    %c0_56 = arith.constant 0 : index
    %c0_57 = arith.constant 0 : index
    %232 = vector.load %arg7[%c0_55, %c0_56, %c0_57] : memref<2x32x32xbf16, #tpu.memory_space<vmem>>, vector<1x32x32xbf16>
    %233 = vector.shape_cast %232 : vector<1x32x32xbf16> to vector<32x32xbf16>
    %cst_58 = arith.constant dense<0.000000e+00> : vector<8x32xf32>
    %234 = tpu.matmul %231, %233, %cst_58 {dimension_numbers = #tpu.dot_dimension_numbers<[1], [0], [0], [1], [0, 0, 1, 1], [], []>} : vector<8x32xbf16>, vector<32x32xbf16>, vector<8x32xf32> -> vector<8x32xf32>
    %c0_59 = arith.constant 0 : index
    %c0_60 = arith.constant 0 : index
    %c0_61 = arith.constant 0 : index
    %235 = vector.load %arg8[%c0_59, %c0_60, %c0_61] : memref<2x1x32xf32, #tpu.memory_space<vmem>>, vector<1x1x32xf32>
    %236 = vector.shape_cast %235 : vector<1x1x32xf32> to vector<1x32xf32>
    %237 = vector.broadcast %236 : vector<1x32xf32> to vector<8x32xf32>
    %238 = arith.addf %234, %237 : vector<8x32xf32>
    %cst_62 = arith.constant 0.000000e+00 : f32
    %239 = vector.broadcast %cst_62 : f32 to vector<8x32xf32>
    %240 = arith.maximumf %238, %239 : vector<8x32xf32>
    %241 = arith.truncf %240 : vector<8x32xf32> to vector<8x32xbf16>
    %c1_63 = arith.constant 1 : index
    %c0_64 = arith.constant 0 : index
    %c0_65 = arith.constant 0 : index
    %242 = vector.load %arg7[%c1_63, %c0_64, %c0_65] : memref<2x32x32xbf16, #tpu.memory_space<vmem>>, vector<1x32x32xbf16>
    %243 = vector.shape_cast %242 : vector<1x32x32xbf16> to vector<32x32xbf16>
    %cst_66 = arith.constant dense<0.000000e+00> : vector<8x32xf32>
    %244 = tpu.matmul %241, %243, %cst_66 {dimension_numbers = #tpu.dot_dimension_numbers<[1], [0], [0], [1], [0, 0, 1, 1], [], []>} : vector<8x32xbf16>, vector<32x32xbf16>, vector<8x32xf32> -> vector<8x32xf32>
    %c1_67 = arith.constant 1 : index
    %c0_68 = arith.constant 0 : index
    %c0_69 = arith.constant 0 : index
    %245 = vector.load %arg8[%c1_67, %c0_68, %c0_69] : memref<2x1x32xf32, #tpu.memory_space<vmem>>, vector<1x1x32xf32>
    %246 = vector.shape_cast %245 : vector<1x1x32xf32> to vector<1x32xf32>
    %247 = vector.broadcast %246 : vector<1x32xf32> to vector<8x32xf32>
    %248 = arith.addf %244, %247 : vector<8x32xf32>
    %cst_70 = arith.constant 0.000000e+00 : f32
    %249 = vector.broadcast %cst_70 : f32 to vector<8x32xf32>
    %250 = arith.maximumf %248, %249 : vector<8x32xf32>
    %251 = arith.truncf %250 : vector<8x32xf32> to vector<8x32xbf16>
    %c0_71 = arith.constant 0 : index
    %c0_72 = arith.constant 0 : index
    %252 = vector.load %arg9[%c0_71, %c0_72] : memref<32x128xbf16, #tpu.memory_space<vmem>>, vector<32x128xbf16>
    %cst_73 = arith.constant dense<0.000000e+00> : vector<8x128xf32>
    %253 = tpu.matmul %251, %252, %cst_73 {dimension_numbers = #tpu.dot_dimension_numbers<[1], [0], [0], [1], [0, 0, 1, 1], [], []>} : vector<8x32xbf16>, vector<32x128xbf16>, vector<8x128xf32> -> vector<8x128xf32>
    %c0_74 = arith.constant 0 : index
    %c0_75 = arith.constant 0 : index
    %254 = vector.load %arg10[%c0_74, %c0_75] : memref<1x128xf32, #tpu.memory_space<vmem>>, vector<1x128xf32>
    %255 = vector.broadcast %254 : vector<1x128xf32> to vector<8x128xf32>
    %256 = arith.addf %253, %255 : vector<8x128xf32>
    %c0_76 = arith.constant 0 : index
    %c0_77 = arith.constant 0 : index
    %c0_78 = arith.constant 0 : index
    %257 = vector.load %arg11[%c0_76, %c0_77, %c0_78] : memref<1x8x128xf32, #tpu.memory_space<vmem>>, vector<1x8x128xf32>
    %258 = vector.shape_cast %257 : vector<1x8x128xf32> to vector<8x128xf32>
    %259 = vector.shape_cast %256 : vector<8x128xf32> to vector<1x8x128xf32>
    tpu.vector_store %arg11[%c0_76, %c0_77, %c0_78], %259 {strides = array<i32>} : memref<1x8x128xf32, #tpu.memory_space<vmem>>, vector<1x8x128xf32>,
    return
  }
  func.func @transform_0(%arg0: i32) -> (i32, i32, i32) {
    %c0_i32 = arith.constant 0 : i32
    %c0_i32_0 = arith.constant 0 : i32
    %c0_i32_1 = arith.constant 0 : i32
    return %arg0, %c0_i32, %c0_i32_0 : i32, i32, i32
  }
  func.func @transform_1(%arg0: i32) -> (i32, i32) {
    %c0_i32 = arith.constant 0 : i32
    %c0_i32_0 = arith.constant 0 : i32
    %c0_i32_1 = arith.constant 0 : i32
    return %c0_i32, %c0_i32_0 : i32, i32
  }
  func.func @transform_2(%arg0: i32) -> (i32, i32) {
    %c0_i32 = arith.constant 0 : i32
    %c0_i32_0 = arith.constant 0 : i32
    %c0_i32_1 = arith.constant 0 : i32
    return %c0_i32, %c0_i32_0 : i32, i32
  }
  func.func @transform_3(%arg0: i32) -> (i32, i32) {
    %c0_i32 = arith.constant 0 : i32
    %c0_i32_0 = arith.constant 0 : i32
    %c0_i32_1 = arith.constant 0 : i32
    return %c0_i32, %c0_i32_0 : i32, i32
  }
  func.func @transform_4(%arg0: i32) -> (i32, i32, i32) {
    %c0_i32 = arith.constant 0 : i32
    %c0_i32_0 = arith.constant 0 : i32
    %c0_i32_1 = arith.constant 0 : i32
    %c0_i32_2 = arith.constant 0 : i32
    return %c0_i32, %c0_i32_0, %c0_i32_1 : i32, i32, i32
  }
  func.func @transform_5(%arg0: i32) -> (i32, i32) {
    %c0_i32 = arith.constant 0 : i32
    %c0_i32_0 = arith.constant 0 : i32
    %c0_i32_1 = arith.constant 0 : i32
    return %c0_i32, %c0_i32_0 : i32, i32
  }
  func.func @transform_6(%arg0: i32) -> (i32, i32, i32) {
    %c0_i32 = arith.constant 0 : i32
    %c0_i32_0 = arith.constant 0 : i32
    %c0_i32_1 = arith.constant 0 : i32
    %c0_i32_2 = arith.constant 0 : i32
    return %c0_i32, %c0_i32_0, %c0_i32_1 : i32, i32, i32
  }
  func.func @transform_7(%arg0: i32) -> (i32, i32, i32) {
    %c0_i32 = arith.constant 0 : i32
    %c0_i32_0 = arith.constant 0 : i32
    %c0_i32_1 = arith.constant 0 : i32
    %c0_i32_2 = arith.constant 0 : i32
    return %c0_i32, %c0_i32_0, %c0_i32_1 : i32, i32, i32
  }
  func.func @transform_8(%arg0: i32) -> (i32, i32) {
    %c0_i32 = arith.constant 0 : i32
    %c0_i32_0 = arith.constant 0 : i32
    %c0_i32_1 = arith.constant 0 : i32
    return %c0_i32, %c0_i32_0 : i32, i32
  }
  func.func @transform_9(%arg0: i32) -> (i32, i32) {
    %c0_i32 = arith.constant 0 : i32
    %c0_i32_0 = arith.constant 0 : i32
    %c0_i32_1 = arith.constant 0 : i32
    return %c0_i32, %c0_i32_0 : i32, i32
  }
  func.func @transform_10(%arg0: i32) -> (i32, i32, i32) {
    %c0_i32 = arith.constant 0 : i32
    %c0_i32_0 = arith.constant 0 : i32
    %c0_i32_1 = arith.constant 0 : i32
    return %arg0, %c0_i32, %c0_i32_0 : i32, i32, i32
  }
}

</mosaic_0001>

<bundles_post_ra>
// kernel: model_forward.1
= control target key start
LH: loop header
LB: loop body
LE: loop exit
PB: predicated region body
PF: predicated region fallthrough
CT: control target
= control target key end

     0   :  { %vm78_vm0 = vcmask 1041408   ;;  %vm65_vm1 = vcmask 31744   ;;  %v1880_v1 = vmov 0.0   ;;  %vm1881_vm2 = vmmov 0   ;;  %s1883_s23 = smov 64   ;;  %s1884_s24 = smov 32   ;;  %s2222_s1 = inlined_call_operand.vmem [shape: bf16[4,128], index: 1, kind: input, shape index: {}]   ;;  %s2223_s2 = inlined_call_operand.vmem [shape: bf16[32,128], index: 2, kind: input, shape index: {}]   ;;  %s2224_s0 = inlined_call_operand.vmem [shape: bf16[1,64,4], index: 0, kind: input, shape index: {}]   ;;  %s2225_s3 = inlined_call_operand.vmem [shape: f32[1,128], index: 3, kind: input, shape index: {}]   ;;  %s2226_s4 = inlined_call_operand.vmem [shape: bf16[8,32,32], index: 4, kind: input, shape index: {}]   ;;  %s2227_s6 = inlined_call_operand.vmem [shape: bf16[2,32,32], index: 6, kind: input, shape index: {}]   ;;  %s2228_s5 = inlined_call_operand.vmem [shape: f32[1,32], index: 5, kind: input, shape index: {}]   ;;  %s2229_s8 = inlined_call_operand.vmem [shape: bf16[32,128], index: 8, kind: input, shape index: {}]   ;;  %s2230_s7 = inlined_call_operand.vmem [shape: f32[2,1,32], index: 7, kind: input, shape index: {}]   ;;  %s2231_s9 = inlined_call_operand.vmem [shape: f32[1,128], index: 9, kind: input, shape index: {}]   ;;  %s2232_s10 = inlined_call_operand.vmem [shape: f32[1,8,128], index: 10, kind: output, shape index: {}]  }
   0x1   :  { %v44_v0 = vld [vmem:[%s2222_s1] sm:$0x3]  ;;  %1630 = vmatprep.subr.bf16.mxu1 %v1880_v1  ;;  %1634 = vmatprep.mubr.msk.bf16.mxu1 %vm1881_vm2, %v1880_v1  ;;  %v1949_v3 = vld [vmem:[%s2223_s2 + $0x8] sm:$0xff]   ;;  %v1882_v7 = vmov 0   ;;  %vm169_vm3 = vcmask 261120   ;;  %v1794_v61 = vld [vmem:[%s2226_s4 + $0x18] sm:$0xff]  }
   0x2   :  { %1782 = vmatprep.subr.msk.bf16.mxu0 %vm78_vm0, %v44_v0  ;;  %v80_v2 = vsel %vm78_vm0, %v44_v0, 0  ;;  %v1789_v4 = vld [vmem:[%s2224_s0] sm:$0xff]   ;;  %1631 = vmatpush3.bf16.msra.mxu1 %v1949_v3  ;;  %v1790_v5 = vld [vmem:[%s2224_s0 + $0x8] sm:$0xff]   ;;  %v1795_v62 = vld [vmem:[%s2224_s0 + $0x10] sm:$0xff]  }
   0x3   :  { %1621 = vmatpush3.bf16.msra.mxu0 %v80_v2  ;;  %1622 = vmatprep.mubr.msk.bf16.mxu0 %vm65_vm1, %v1789_v4  ;;  %v1964_v6 = vld [vmem:[%s2223_s2] sm:$0xff]   ;;  %v1792_v36 = vld [vmem:[%s2226_s4 + $0x8] sm:$0xff]   ;;  %v1796_v63 = vld [vmem:[%s2224_s0 + $0x18] sm:$0xff]  }
   0x4   :  { %1646 = vmatprep.subr.bf16.mxu0 %v1880_v1  ;;  %1632 = vmatprep.subr.bf16.mxu1 %v1880_v1  ;;  %v1980_v18 = vld [vmem:[%s2225_s3] ss:$0 sm:$0xff]  ;;  %v1797_v0 = vld [vmem:[%s2226_s4 + $0x10] sm:$0xff]  }
   0x5   :  { %v1793_v38 = vld [vmem:[%s2226_s4] sm:$0xff]  }
   0x6   :  { %1623 = vmatmul.mubr.msk.bf16.vlgmr.msra.gmra.mxu0 %vm65_vm1, %v1790_v5  ;;  %1633 = vmatpush3.bf16.msra.mxu1 %v1964_v6 }
   0x7   :  { %1638 = vmatprep.subr.bf16.mxu1 %v1880_v1  ;;  %1647 = vmatpush3.bf16.msra.mxu0 %v1794_v61 }
   0x8   :  { %1626 = vmatprep.mubr.msk.bf16.mxu0 %vm65_vm1, %v1795_v62  ;;  %1648 = vmatprep.subr.bf16.mxu0 %v1880_v1 }
   0x9   :  { %1635 = vmatmul.mubr.bf16.vlgmr.msra.gmra.mxu1 %v1882_v7 }
   0xa   :  { %1639 = vmatpush3.bf16.msra.mxu1 %v1949_v3  ;;  %1642 = vmatprep.mubr.msk.bf16.mxu1 %vm1881_vm2, %v1880_v1 }
   0xb   :  { %1640 = vmatprep.subr.bf16.mxu1 %v1880_v1  ;;  %1649 = vmatpush3.bf16.msra.mxu0 %v1797_v0 }
   0xc   :  { %1662 = vmatprep.subr.bf16.mxu0 %v1880_v1 }
   0xe   :  { %1641 = vmatpush3.bf16.msra.mxu1 %v1964_v6  ;;  %1627 = vmatmul.mubr.msk.bf16.gmra.mxu0 %vm65_vm1, %v1796_v63 }
   0xf   :  { %1654 = vmatprep.subr.bf16.mxu1 %v1880_v1  ;;  %1650 = vmatprep.mubr.msk.bf16.mxu0 %vm1881_vm2, %v1880_v1 }
  0xc6   :  { %v1624_v8 = vpop.f32.mrf.mxu0 }
  0xc8   :  { %v116_v9 = vpop.f32.mrf.mxu0 }
  0xc9   :  { %v207_v12 = vpop.f32.mrf.mxu1 }
  0xca   :  { %v1625_v10 = vpop.f32.mrf.mxu0 }
  0xcb   :  { %v1975_v11 = vpack.c.bf16 %v1625_v10, %v1624_v8  ;;  %v1636_v15 = vpop.f32.mrf.mxu1 }
  0xcc   :  { %v119_v13 = vpop.f32.mrf.mxu0 }
  0xcd   :  { %v147_v14 = vpack.c.bf16 %v119_v13, %v116_v9  ;;  %v210_v17 = vpop.f32.mrf.mxu1 }
  0xce   :  { %v1628_v8 = vpop.f32.mrf.mxu0 }
  0xcf   :  { %v156_v16 = vunpack.c.l.bf16 %v147_v14  ;;  %v1637_v20 = vpop.f32.mrf.mxu1  ;;  %v251_v39 = vrot.slane %v147_v14, 4 }
  0xd0   :  { %v2026_v9 = vpop.f32.mrf.mxu0  ;;  %v442_v20 = vunpack.c.l.bf16 %v1975_v11 }
  0xd1   :  { %v213_v19 = vadd.f32 %v207_v12, %v156_v16  ;;  %v253_v40 = vunpack.c.l.bf16 %v251_v39 }
  0xd2   :  { %v1629_v10 = vpop.f32.mrf.mxu0 }
  0xd3   :  { %v220_v21 = vadd.f32 %v1980_v18, %v213_v19  ;;  %v2028_v12 = vpack.c.bf16 %v1629_v10, %v1628_v8 }
  0xd4   :  { %v2044_v14 = vpop.f32.mrf.mxu0 }
  0xd5   :  { %1816 = vtanh.f32 %v220_v21  ;;  %v1473_v23 = vmul.f32 -1.442695, %v220_v21 }
  0xd7   :  { %1818 = vpow2.f32 %v1473_v23 }
  0xe2   :  { %v1817_v22 = vpop.eup %1816 }
  0xe3   :  { %230 = vrot.lane.b32.xlu0 %v1817_v22, %s1883_s23 }
  0xe4   :  { %v1819_v24 = vpop.eup %1818 }
  0xe5   :  { %v224_v25 = vadd.f32 1.0, %v1819_v24 }
  0xe7   :  { %1820 = vrcp.f32 %v224_v25 }
  0xf4   :  { %v1821_v26 = vpop.eup %1820 }
  0xf5   :  { %v228_v29 = vmul.f32 0.0, %v1821_v26 }
 0x155   :  { %v231_v27 = vpop.permute.xlu0 %230 }
 0x156   :  { %v233_v28 = vmul.f32 %v1821_v26, %v231_v27 }
 0x158   :  { %235 = vrot.lane.b32.xlu0 %v233_v28, %s1884_s24 }
 0x1ca   :  { %v236_v30 = vpop.permute.xlu0 %235 }
 0x1cb   :  { %v238_v31 = vadd.f32 %v236_v30, %v228_v29 }
 0x1cd   :  { %1822 = vtanh.f32 %v238_v31 }
 0x1da   :  { %v1823_v32 = vpop.eup %1822 }
 0x1db   :  { %241 = vrot.lane.b32.xlu1 %v1823_v32, %s1883_s23 }
 0x24d   :  { %v242_v33 = vpop.permute.xlu1 %241 }
 0x24e   :  { %v244_v34 = vmul.f32 %v1821_v26, %v242_v33 }
 0x250   :  { %v245_v35 = vpack.c.bf16 %v244_v34, %v244_v34 }
 0x252   :  { %255 = vrot.lane.b32.xlu1 %v245_v35, %s1884_s24 }
 0x2c4   :  { %v256_v37 = vpop.permute.xlu1 %255 }
 0x2c5   :  { %1643 = vmatmul.mubr.msk.bf16.vlgmr.msra.gmra.mxu1 %vm169_vm3, %v256_v37 }
 0x2c6   :  { %1655 = vmatpush3.bf16.msra.mxu1 %v1792_v36  ;;  %1658 = vmatprep.mubr.msk.bf16.mxu1 %vm1881_vm2, %v1880_v1 }
 0x2c7   :  { %1656 = vmatprep.subr.bf16.mxu1 %v1880_v1 }
 0x2ca   :  { %1657 = vmatpush3.bf16.msra.mxu1 %v1793_v38  ;;  %v1799_v38 = vld [vmem:[%s2226_s4 + $0x20] sm:$0xff]  }
 0x2cb   :  { %1670 = vmatprep.subr.bf16.mxu1 %v1880_v1 }
 0x2cd   :  { %1659 = vmatmul.mubr.msk.bf16.vlgmr.msra.gmra.mxu1 %vm169_vm3, %v256_v37  ;;  %v1798_v37 = vld [vmem:[%s2226_s4 + $0x28] sm:$0xff]  }
 0x2ce   :  { %1674 = vmatprep.mubr.msk.bf16.mxu1 %vm1881_vm2, %v1880_v1  ;;  %1671 = vmatpush3.bf16.msra.mxu1 %v1798_v37 }
 0x2cf   :  { %1672 = vmatprep.subr.bf16.mxu1 %v1880_v1 }
 0x2d2   :  { %1673 = vmatpush3.bf16.msra.mxu1 %v1799_v38 }
 0x2d3   :  { %1686 = vmatprep.subr.bf16.mxu1 %v1880_v1 }
 0x385   :  { %v294_v41 = vpop.f32.mrf.mxu1 }
 0x386   :  { %v300_v42 = vadd.f32 %v294_v41, %v253_v40 }
 0x387   :  { %v1644_v43 = vpop.f32.mrf.mxu1 }
 0x388   :  { %v301_v44 = vadd.f32 %v1980_v18, %v300_v42 }
 0x389   :  { %v297_v45 = vpop.f32.mrf.mxu1 }
 0x38a   :  { %1824 = vtanh.f32 %v301_v44  ;;  %v1475_v52 = vmul.f32 -1.442695, %v301_v44  ;;  %v575_v44 = vrot.slane %v1975_v11, 4 }
 0x38b   :  { %v1645_v46 = vpop.f32.mrf.mxu1 }
 0x38c   :  { %1826 = vpow2.f32 %v1475_v52  ;;  %v577_v46 = vunpack.c.l.bf16 %v575_v44 }
 0x38d   :  { %v2002_v47 = vpop.f32.mrf.mxu1 }
 0x38f   :  { %v1660_v48 = vpop.f32.mrf.mxu1 }
 0x391   :  { %v439_v49 = vpop.f32.mrf.mxu1 }
 0x393   :  { %v1661_v50 = vpop.f32.mrf.mxu1 }
 0x397   :  { %v1825_v51 = vpop.eup %1824 }
 0x398   :  { %311 = vrot.lane.b32.xlu0 %v1825_v51, %s1883_s23 }
 0x399   :  { %v1827_v53 = vpop.eup %1826 }
 0x39a   :  { %v305_v54 = vadd.f32 1.0, %v1827_v53 }
 0x39c   :  { %1828 = vrcp.f32 %v305_v54 }
 0x3a9   :  { %v1829_v55 = vpop.eup %1828 }
 0x3aa   :  { %v309_v58 = vmul.f32 %v1829_v55, %v238_v31 }
 0x40a   :  { %v312_v56 = vpop.permute.xlu0 %311 }
 0x40b   :  { %v314_v57 = vmul.f32 %v1829_v55, %v312_v56 }
 0x40d   :  { %316 = vrot.lane.b32.xlu1 %v314_v57, %s1884_s24 }
 0x47f   :  { %v317_v59 = vpop.permute.xlu1 %316 }
 0x480   :  { %v319_v60 = vadd.f32 %v317_v59, %v309_v58 }
 0x482   :  { %1830 = vtanh.f32 %v319_v60 }
 0x48f   :  { %v1831_v2 = vpop.eup %1830 }
 0x490   :  { %322 = vrot.lane.b32.xlu0 %v1831_v2, %s1883_s23 }
 0x502   :  { %v323_v4 = vpop.permute.xlu0 %322 }
 0x503   :  { %v325_v5 = vmul.f32 %v1829_v55, %v323_v4 }
 0x505   :  { %v326_v7 = vpack.c.bf16 %v325_v5, %v325_v5  ;;  %v1800_v5 = vld [vmem:[%s2226_s4 + $0x38] sm:$0xff]  }
 0x507   :  { %333 = vrot.lane.b32.xlu1 %v326_v7, %s1884_s24  ;;  %v1801_v7 = vld [vmem:[%s2226_s4 + $0x30] sm:$0xff]  }
 0x579   :  { %v334_v13 = vpop.permute.xlu1 %333 }
 0x57a   :  { %1651 = vmatmul.mubr.msk.bf16.vlgmr.msra.gmra.mxu0 %vm169_vm3, %v334_v13 }
 0x57b   :  { %1663 = vmatpush3.bf16.msra.mxu0 %v1949_v3  ;;  %1666 = vmatprep.mubr.msk.bf16.mxu0 %vm1881_vm2, %v1880_v1 }
 0x57c   :  { %1664 = vmatprep.subr.bf16.mxu0 %v1880_v1 }
 0x57f   :  { %1665 = vmatpush3.bf16.msra.mxu0 %v1964_v6 }
 0x580   :  { %1678 = vmatprep.subr.bf16.mxu0 %v1880_v1 }
 0x582   :  { %1667 = vmatmul.mubr.msk.bf16.vlgmr.msra.gmra.mxu0 %vm169_vm3, %v334_v13 }
 0x583   :  { %1679 = vmatpush3.bf16.msra.mxu0 %v1949_v3  ;;  %1682 = vmatprep.mubr.msk.bf16.mxu0 %vm1881_vm2, %v1880_v1 }
 0x584   :  { %1680 = vmatprep.subr.bf16.mxu0 %v1880_v1 }
 0x587   :  { %1681 = vmatpush3.bf16.msra.mxu0 %v1964_v6 }
 0x588   :  { %1694 = vmatprep.subr.bf16.mxu0 %v1880_v1 }
 0x63a   :  { %v384_v15 = vpop.f32.mrf.mxu0 }
 0x63b   :  { %v437_v45 = vadd.f32 %v2002_v47, %v384_v15 }
 0x63c   :  { %v1652_v16 = vpop.f32.mrf.mxu0 }
 0x63e   :  { %v387_v17 = vpop.f32.mrf.mxu0 }
 0x63f   :  { %v149_v17 = vpack.c.bf16 %v2044_v14, %v2026_v9 }
 0x640   :  { %v1653_v19 = vpop.f32.mrf.mxu0 }
 0x641   :  { %v709_v19 = vunpack.c.l.bf16 %v149_v17 }
 0x642   :  { %v477_v21 = vpop.f32.mrf.mxu0 }
 0x643   :  { %v483_v22 = vadd.f32 %v477_v21, %v442_v20 }
 0x644   :  { %v1668_v23 = vpop.f32.mrf.mxu0 }
 0x645   :  { %v484_v24 = vadd.f32 %v1980_v18, %v483_v22 }
 0x646   :  { %v480_v25 = vpop.f32.mrf.mxu0 }
 0x647   :  { %1832 = vtanh.f32 %v484_v24  ;;  %v1487_v28 = vmul.f32 -1.442695, %v484_v24 }
 0x648   :  { %v1669_v26 = vpop.f32.mrf.mxu0 }
 0x649   :  { %1834 = vpow2.f32 %v1487_v28 }
 0x654   :  { %v1833_v27 = vpop.eup %1832 }
 0x655   :  { %494 = vrot.lane.b32.xlu0 %v1833_v27, %s1883_s23 }
 0x656   :  { %v1835_v29 = vpop.eup %1834 }
 0x657   :  { %v488_v30 = vadd.f32 1.0, %v1835_v29 }
 0x659   :  { %1836 = vrcp.f32 %v488_v30 }
 0x666   :  { %v1837_v31 = vpop.eup %1836 }
 0x667   :  { %v492_v34 = vmul.f32 %v1837_v31, %v319_v60 }
 0x6c7   :  { %v495_v32 = vpop.permute.xlu0 %494 }
 0x6c8   :  { %v497_v33 = vmul.f32 %v1837_v31, %v495_v32 }
 0x6ca   :  { %499 = vrot.lane.b32.xlu1 %v497_v33, %s1884_s24 }
 0x73c   :  { %v500_v35 = vpop.permute.xlu1 %499 }
 0x73d   :  { %v502_v36 = vadd.f32 %v500_v35, %v492_v34 }
 0x73f   :  { %1838 = vtanh.f32 %v502_v36 }
 0x74c   :  { %v1839_v39 = vpop.eup %1838 }
 0x74d   :  { %505 = vrot.lane.b32.xlu0 %v1839_v39, %s1883_s23  ;;  %v1802_v39 = vld [vmem:[%s2226_s4 + $0x48] sm:$0xff]  }
 0x7bf   :  { %v506_v40 = vpop.permute.xlu0 %505 }
 0x7c0   :  { %v508_v41 = vmul.f32 %v1837_v31, %v506_v40  ;;  %v1803_v40 = vld [vmem:[%s2226_s4 + $0x40] sm:$0xff]  }
 0x7c2   :  { %v509_v42 = vpack.c.bf16 %v508_v41, %v508_v41 }
 0x7c4   :  { %516 = vrot.lane.b32.xlu1 %v509_v42, %s1884_s24 }
 0x836   :  { %v517_v43 = vpop.permute.xlu1 %516 }
 0x837   :  { %1675 = vmatmul.mubr.msk.bf16.vlgmr.msra.gmra.mxu1 %vm169_vm3, %v517_v43  ;;  %1683 = vmatmul.mubr.msk.bf16.vlgmr.msra.gmra.mxu0 %vm169_vm3, %v517_v43 }
 0x838   :  { %1695 = vmatpush3.bf16.msra.mxu0 %v1949_v3  ;;  %1690 = vmatprep.mubr.msk.bf16.mxu1 %vm1881_vm2, %v1880_v1 }
 0x839   :  { %1696 = vmatprep.subr.bf16.mxu0 %v1880_v1  ;;  %1698 = vmatprep.mubr.msk.bf16.mxu0 %vm1881_vm2, %v1880_v1 }
 0x83a   :  { %1687 = vmatpush3.bf16.msra.mxu1 %v1800_v5 }
 0x83b   :  { %1688 = vmatprep.subr.bf16.mxu1 %v1880_v1 }
 0x83c   :  { %1697 = vmatpush3.bf16.msra.mxu0 %v1964_v6 }
 0x83d   :  { %1710 = vmatprep.subr.bf16.mxu0 %v1880_v1 }
 0x83e   :  { %1689 = vmatpush3.bf16.msra.mxu1 %v1801_v7  ;;  %v1804_v7 = vld [vmem:[%s2226_s4 + $0x58] sm:$0xff]  }
 0x83f   :  { %1702 = vmatprep.subr.bf16.mxu1 %v1880_v1 }
 0x8f7   :  { %v567_v48 = vpop.f32.mrf.mxu1  ;;  %v612_v49 = vpop.f32.mrf.mxu0 }
 0x8f8   :  { %v573_v50 = vadd.f32 %v567_v48, %v437_v45  ;;  %v618_v51 = vadd.f32 %v612_v49, %v577_v46  ;;  %v842_v46 = vrot.slane %v149_v17, 4 }
 0x8f9   :  { %v1676_v52 = vpop.f32.mrf.mxu1  ;;  %v1684_v53 = vpop.f32.mrf.mxu0 }
 0x8fa   :  { %v619_v54 = vadd.f32 %v1980_v18, %v618_v51  ;;  %v844_v48 = vunpack.c.l.bf16 %v842_v46 }
 0x8fb   :  { %v570_v55 = vpop.f32.mrf.mxu1  ;;  %v615_v56 = vpop.f32.mrf.mxu0 }
 0x8fc   :  { %1840 = vtanh.f32 %v619_v54  ;;  %v1496_v11 = vmul.f32 -1.442695, %v619_v54 }
 0x8fd   :  { %v1677_v57 = vpop.f32.mrf.mxu1  ;;  %v1685_v58 = vpop.f32.mrf.mxu0 }
 0x8fe   :  { %1842 = vpow2.f32 %v1496_v11 }
 0x909   :  { %v1841_v59 = vpop.eup %1840 }
 0x90a   :  { %629 = vrot.lane.b32.xlu0 %v1841_v59, %s1883_s23 }
 0x90b   :  { %v1843_v47 = vpop.eup %1842 }
 0x90c   :  { %v623_v60 = vadd.f32 1.0, %v1843_v47 }
 0x90e   :  { %1844 = vrcp.f32 %v623_v60 }
 0x91b   :  { %v1845_v61 = vpop.eup %1844 }
 0x91c   :  { %v627_v0 = vmul.f32 %v1845_v61, %v502_v36 }
 0x97c   :  { %v630_v62 = vpop.permute.xlu0 %629 }
 0x97d   :  { %v632_v63 = vmul.f32 %v1845_v61, %v630_v62 }
 0x97f   :  { %634 = vrot.lane.b32.xlu1 %v632_v63, %s1884_s24 }
 0x9f1   :  { %v635_v2 = vpop.permute.xlu1 %634 }
 0x9f2   :  { %v637_v4 = vadd.f32 %v635_v2, %v627_v0 }
 0x9f4   :  { %1846 = vtanh.f32 %v637_v4 }
 0xa01   :  { %v1847_v8 = vpop.eup %1846 }
 0xa02   :  { %640 = vrot.lane.b32.xlu0 %v1847_v8, %s1883_s23  ;;  %v1805_v8 = vld [vmem:[%s2226_s4 + $0x50] sm:$0xff]  }
 0xa74   :  { %v641_v10 = vpop.permute.xlu0 %640 }
 0xa75   :  { %v643_v13 = vmul.f32 %v1845_v61, %v641_v10 }
 0xa77   :  { %v644_v15 = vpack.c.bf16 %v643_v13, %v643_v13 }
 0xa79   :  { %651 = vrot.lane.b32.xlu1 %v644_v15, %s1884_s24 }
 0xaeb   :  { %v652_v16 = vpop.permute.xlu1 %651 }
 0xaec   :  { %1691 = vmatmul.mubr.msk.bf16.vlgmr.msra.gmra.mxu1 %vm169_vm3, %v652_v16  ;;  %1699 = vmatmul.mubr.msk.bf16.vlgmr.msra.gmra.mxu0 %vm169_vm3, %v652_v16 }
 0xaed   :  { %1711 = vmatpush3.bf16.msra.mxu0 %v1949_v3  ;;  %1706 = vmatprep.mubr.msk.bf16.mxu1 %vm1881_vm2, %v1880_v1 }
 0xaee   :  { %1712 = vmatprep.subr.bf16.mxu0 %v1880_v1  ;;  %1714 = vmatprep.mubr.msk.bf16.mxu0 %vm1881_vm2, %v1880_v1 }
 0xaef   :  { %1703 = vmatpush3.bf16.msra.mxu1 %v1802_v39 }
 0xaf0   :  { %1704 = vmatprep.subr.bf16.mxu1 %v1880_v1 }
 0xaf1   :  { %1713 = vmatpush3.bf16.msra.mxu0 %v1964_v6 }
 0xaf2   :  { %1726 = vmatprep.subr.bf16.mxu0 %v1880_v1 }
 0xaf3   :  { %1705 = vmatpush3.bf16.msra.mxu1 %v1803_v40 }
 0xaf4   :  { %1718 = vmatprep.subr.bf16.mxu1 %v1880_v1 }
 0xbac   :  { %v702_v20 = vpop.f32.mrf.mxu1  ;;  %v744_v21 = vpop.f32.mrf.mxu0 }
 0xbad   :  { %v708_v22 = vadd.f32 %v702_v20, %v573_v50  ;;  %v750_v23 = vadd.f32 %v744_v21, %v709_v19  ;;  %v976_v19 = vunpack.c.l.bf16 %v2028_v12 }
 0xbae   :  { %v1692_v24 = vpop.f32.mrf.mxu1  ;;  %v1700_v25 = vpop.f32.mrf.mxu0 }
 0xbaf   :  { %v751_v26 = vadd.f32 %v1980_v18, %v750_v23 }
 0xbb0   :  { %v705_v27 = vpop.f32.mrf.mxu1  ;;  %v747_v28 = vpop.f32.mrf.mxu0 }
 0xbb1   :  { %1848 = vtanh.f32 %v751_v26  ;;  %v1505_v32 = vmul.f32 -1.442695, %v751_v26 }
 0xbb2   :  { %v1693_v29 = vpop.f32.mrf.mxu1  ;;  %v1701_v30 = vpop.f32.mrf.mxu0 }
 0xbb3   :  { %1850 = vpow2.f32 %v1505_v32 }
 0xbbe   :  { %v1849_v31 = vpop.eup %1848 }
 0xbbf   :  { %761 = vrot.lane.b32.xlu0 %v1849_v31, %s1883_s23 }
 0xbc0   :  { %v1851_v9 = vpop.eup %1850 }
 0xbc1   :  { %v755_v14 = vadd.f32 1.0, %v1851_v9 }
 0xbc3   :  { %1852 = vrcp.f32 %v755_v14 }
 0xbd0   :  { %v1853_v33 = vpop.eup %1852 }
 0xbd1   :  { %v759_v36 = vmul.f32 %v1853_v33, %v637_v4 }
 0xc31   :  { %v762_v34 = vpop.permute.xlu0 %761 }
 0xc32   :  { %v764_v35 = vmul.f32 %v1853_v33, %v762_v34 }
 0xc34   :  { %766 = vrot.lane.b32.xlu1 %v764_v35, %s1884_s24 }
 0xca6   :  { %v767_v37 = vpop.permute.xlu1 %766 }
 0xca7   :  { %v769_v38 = vadd.f32 %v767_v37, %v759_v36  ;;  %v1806_v37 = vld [vmem:[%s2226_s4 + $0x68] sm:$0xff]  }
 0xca9   :  { %1854 = vtanh.f32 %v769_v38 }
 0xcb6   :  { %v1855_v41 = vpop.eup %1854 }
 0xcb7   :  { %772 = vrot.lane.b32.xlu0 %v1855_v41, %s1883_s23 }
 0xd29   :  { %v773_v42 = vpop.permute.xlu0 %772 }
 0xd2a   :  { %v775_v43 = vmul.f32 %v1853_v33, %v773_v42 }
 0xd2c   :  { %v776_v44 = vpack.c.bf16 %v775_v43, %v775_v43 }
 0xd2e   :  { %783 = vrot.lane.b32.xlu1 %v776_v44, %s1884_s24  ;;  %v1109_v44 = vrot.slane %v2028_v12, 4 }
 0xda0   :  { %v784_v45 = vpop.permute.xlu1 %783 }
 0xda1   :  { %1707 = vmatmul.mubr.msk.bf16.vlgmr.msra.gmra.mxu1 %vm169_vm3, %v784_v45  ;;  %1715 = vmatmul.mubr.msk.bf16.vlgmr.msra.gmra.mxu0 %vm169_vm3, %v784_v45  ;;  %v1111_v45 = vunpack.c.l.bf16 %v1109_v44 }
 0xda2   :  { %1727 = vmatpush3.bf16.msra.mxu0 %v1949_v3  ;;  %1730 = vmatprep.mubr.msk.bf16.mxu0 %vm1881_vm2, %v1880_v1 }
 0xda3   :  { %1728 = vmatprep.subr.bf16.mxu0 %v1880_v1  ;;  %1722 = vmatprep.mubr.msk.bf16.mxu1 %vm1881_vm2, %v1880_v1 }
 0xda4   :  { %1719 = vmatpush3.bf16.msra.mxu1 %v1804_v7 }
 0xda5   :  { %1720 = vmatprep.subr.bf16.mxu1 %v1880_v1 }
 0xda6   :  { %1729 = vmatpush3.bf16.msra.mxu0 %v1964_v6 }
 0xda7   :  { %1742 = vmatprep.subr.bf16.mxu0 %v1880_v1 }
 0xda8   :  { %1721 = vmatpush3.bf16.msra.mxu1 %v1805_v8 }
 0xda9   :  { %1734 = vmatprep.subr.bf16.mxu1 %v1880_v1 }
 0xe61   :  { %v834_v49 = vpop.f32.mrf.mxu1  ;;  %v879_v50 = vpop.f32.mrf.mxu0 }
 0xe62   :  { %v840_v51 = vadd.f32 %v834_v49, %v708_v22  ;;  %v885_v52 = vadd.f32 %v879_v50, %v844_v48 }
 0xe63   :  { %v1708_v53 = vpop.f32.mrf.mxu1  ;;  %v1716_v54 = vpop.f32.mrf.mxu0 }
 0xe64   :  { %v886_v55 = vadd.f32 %v1980_v18, %v885_v52 }
 0xe65   :  { %v837_v56 = vpop.f32.mrf.mxu1  ;;  %v882_v57 = vpop.f32.mrf.mxu0 }
 0xe66   :  { %1856 = vtanh.f32 %v886_v55  ;;  %v1514_v47 = vmul.f32 -1.442695, %v886_v55 }
 0xe67   :  { %v1709_v58 = vpop.f32.mrf.mxu1  ;;  %v1717_v59 = vpop.f32.mrf.mxu0 }
 0xe68   :  { %1858 = vpow2.f32 %v1514_v47 }
 0xe73   :  { %v1857_v11 = vpop.eup %1856 }
 0xe74   :  { %896 = vrot.lane.b32.xlu0 %v1857_v11, %s1883_s23 }
 0xe75   :  { %v1859_v60 = vpop.eup %1858 }
 0xe76   :  { %v890_v61 = vadd.f32 1.0, %v1859_v60 }
 0xe78   :  { %1860 = vrcp.f32 %v890_v61 }
 0xe85   :  { %v1861_v62 = vpop.eup %1860 }
 0xe86   :  { %v894_v2 = vmul.f32 %v1861_v62, %v769_v38  ;;  %v1807_v38 = vld [vmem:[%s2226_s4 + $0x60] sm:$0xff]  }
 0xee6   :  { %v897_v63 = vpop.permute.xlu0 %896 }
 0xee7   :  { %v899_v0 = vmul.f32 %v1861_v62, %v897_v63 }
 0xee9   :  { %901 = vrot.lane.b32.xlu1 %v899_v0, %s1884_s24  ;;  %v1808_v0 = vld [vmem:[%s2226_s4 + $0x78] sm:$0xff]  }
 0xf5b   :  { %v902_v4 = vpop.permute.xlu1 %901 }
 0xf5c   :  { %v904_v5 = vadd.f32 %v902_v4, %v894_v2  ;;  %v1809_v2 = vld [vmem:[%s2226_s4 + $0x70] sm:$0xff]  }
 0xf5e   :  { %1862 = vtanh.f32 %v904_v5 }
 0xf6b   :  { %v1863_v10 = vpop.eup %1862 }
 0xf6c   :  { %907 = vrot.lane.b32.xlu0 %v1863_v10, %s1883_s23 }
 0xfde   :  { %v908_v13 = vpop.permute.xlu0 %907 }
 0xfdf   :  { %v910_v15 = vmul.f32 %v1861_v62, %v908_v13  ;;  %v1810_v13 = vld [vmem:[%s2227_s6 + $0x8] sm:$0xff]  }
 0xfe1   :  { %v911_v16 = vpack.c.bf16 %v910_v15, %v910_v15  ;;  %v1811_v15 = vld [vmem:[%s2227_s6] sm:$0xff]  }
 0xfe3   :  { %918 = vrot.lane.b32.xlu1 %v911_v16, %s1884_s24  ;;  %v1812_v16 = vld [vmem:[%s2227_s6 + $0x18] sm:$0xff]  }
0x1055   :  { %v919_v17 = vpop.permute.xlu1 %918 }
0x1056   :  { %1723 = vmatmul.mubr.msk.bf16.vlgmr.msra.gmra.mxu1 %vm169_vm3, %v919_v17  ;;  %1731 = vmatmul.mubr.msk.bf16.vlgmr.msra.gmra.mxu0 %vm169_vm3, %v919_v17 }
0x1057   :  { %1743 = vmatpush3.bf16.msra.mxu0 %v1949_v3  ;;  %1746 = vmatprep.mubr.msk.bf16.mxu0 %vm1881_vm2, %v1880_v1 }
0x1058   :  { %1744 = vmatprep.subr.bf16.mxu0 %v1880_v1  ;;  %1738 = vmatprep.mubr.msk.bf16.mxu1 %vm1881_vm2, %v1880_v1 }
0x1059   :  { %1735 = vmatpush3.bf16.msra.mxu1 %v1806_v37 }
0x105a   :  { %1736 = vmatprep.subr.bf16.mxu1 %v1880_v1 }
0x105b   :  { %1745 = vmatpush3.bf16.msra.mxu0 %v1964_v6 }
0x105c   :  { %1758 = vmatprep.subr.bf16.mxu0 %v1880_v1 }
0x105d   :  { %1737 = vmatpush3.bf16.msra.mxu1 %v1807_v38 }
0x105e   :  { %1750 = vmatprep.subr.bf16.mxu1 %v1880_v1 }
0x1116   :  { %v969_v20 = vpop.f32.mrf.mxu1  ;;  %v1011_v21 = vpop.f32.mrf.mxu0 }
0x1117   :  { %v975_v22 = vadd.f32 %v969_v20, %v840_v51  ;;  %v1017_v23 = vadd.f32 %v1011_v21, %v976_v19  ;;  %v1540_v19 = vld [vmem:[%s2228_s5] ss:$0 sm:$0xff] }
0x1118   :  { %v1724_v24 = vpop.f32.mrf.mxu1  ;;  %v1732_v3 = vpop.f32.mrf.mxu0 }
0x1119   :  { %v1018_v25 = vadd.f32 %v1980_v18, %v1017_v23 }
0x111a   :  { %v972_v26 = vpop.f32.mrf.mxu1  ;;  %v1014_v27 = vpop.f32.mrf.mxu0 }
0x111b   :  { %1864 = vtanh.f32 %v1018_v25  ;;  %v1523_v6 = vmul.f32 -1.442695, %v1018_v25  ;;  %v1813_v26 = vld [vmem:[%s2227_s6 + $0x10] sm:$0xff]   ;;  %v1814_v27 = vld [vmem:[%s2229_s8 + $0x8] sm:$0xff]  }
0x111c   :  { %v1725_v28 = vpop.f32.mrf.mxu1  ;;  %v1733_v29 = vpop.f32.mrf.mxu0 }
0x111d   :  { %1866 = vpow2.f32 %v1523_v6  ;;  %v1541_v28 = vld [vmem:[%s2230_s7] ss:$0 sm:$0xff] }
0x1128   :  { %v1865_v30 = vpop.eup %1864 }
0x1129   :  { %1028 = vrot.lane.b32.xlu0 %v1865_v30, %s1883_s23 }
0x112a   :  { %v1867_v31 = vpop.eup %1866 }
0x112b   :  { %v1022_v32 = vadd.f32 1.0, %v1867_v31 }
0x112d   :  { %1868 = vrcp.f32 %v1022_v32 }
0x113a   :  { %v1869_v9 = vpop.eup %1868 }
0x113b   :  { %v1026_v34 = vmul.f32 %v1869_v9, %v904_v5 }
0x119b   :  { %v1029_v14 = vpop.permute.xlu0 %1028 }
0x119c   :  { %v1031_v33 = vmul.f32 %v1869_v9, %v1029_v14 }
0x119e   :  { %1033 = vrot.lane.b32.xlu1 %v1031_v33, %s1884_s24  ;;  %v1815_v33 = vld [vmem:[%s2229_s8] sm:$0xff]  }
0x1210   :  { %v1034_v35 = vpop.permute.xlu1 %1033 }
0x1211   :  { %v1036_v36 = vadd.f32 %v1034_v35, %v1026_v34 }
0x1213   :  { %1870 = vtanh.f32 %v1036_v36 }
0x1220   :  { %v1871_v39 = vpop.eup %1870 }
0x1221   :  { %1039 = vrot.lane.b32.xlu0 %v1871_v39, %s1883_s23 }
0x1293   :  { %v1040_v40 = vpop.permute.xlu0 %1039 }
0x1294   :  { %v1042_v41 = vmul.f32 %v1869_v9, %v1040_v40 }
0x1296   :  { %v1043_v42 = vpack.c.bf16 %v1042_v41, %v1042_v41  ;;  %v1554_v41 = vld [vmem:[%s2231_s9] ss:$0 sm:$0xff] }
0x1298   :  { %1050 = vrot.lane.b32.xlu1 %v1043_v42, %s1884_s24 }
0x130a   :  { %v1051_v43 = vpop.permute.xlu1 %1050 }
0x130b   :  { %1739 = vmatmul.mubr.msk.bf16.vlgmr.msra.gmra.mxu1 %vm169_vm3, %v1051_v43  ;;  %1747 = vmatmul.mubr.msk.bf16.vlgmr.msra.gmra.mxu0 %vm169_vm3, %v1051_v43 }
0x130c   :  { %1754 = vmatprep.mubr.msk.bf16.mxu1 %vm1881_vm2, %v1880_v1  ;;  %1762 = vmatprep.mubr.msk.bf16.mxu0 %vm1881_vm2, %v1880_v1 }
0x130d   :  { %1751 = vmatpush3.bf16.msra.mxu1 %v1808_v0  ;;  %1759 = vmatpush3.bf16.msra.mxu0 %v1810_v13 }
0x130e   :  { %1752 = vmatprep.subr.bf16.mxu1 %v1880_v1  ;;  %1760 = vmatprep.subr.bf16.mxu0 %v1880_v1 }
0x1311   :  { %1753 = vmatpush3.bf16.msra.mxu1 %v1809_v2  ;;  %1761 = vmatpush3.bf16.msra.mxu0 %v1811_v15 }
0x1312   :  { %1766 = vmatprep.subr.bf16.mxu1 %v1880_v1  ;;  %1774 = vmatprep.subr.bf16.mxu0 %v1880_v1 }
0x13cb   :  { %v1101_v46 = vpop.f32.mrf.mxu1  ;;  %v1146_v48 = vpop.f32.mrf.mxu0 }
0x13cc   :  { %v1107_v49 = vadd.f32 %v1101_v46, %v975_v22  ;;  %v1152_v50 = vadd.f32 %v1146_v48, %v1111_v45 }
0x13cd   :  { %v1740_v51 = vpop.f32.mrf.mxu1  ;;  %v1748_v52 = vpop.f32.mrf.mxu0 }
0x13ce   :  { %v1153_v53 = vadd.f32 %v1980_v18, %v1152_v50 }
0x13cf   :  { %v1104_v54 = vpop.f32.mrf.mxu1  ;;  %v1149_v55 = vpop.f32.mrf.mxu0 }
0x13d0   :  { %1872 = vtanh.f32 %v1153_v53  ;;  %v1532_v59 = vmul.f32 -1.442695, %v1153_v53 }
0x13d1   :  { %v1741_v56 = vpop.f32.mrf.mxu1  ;;  %v1749_v57 = vpop.f32.mrf.mxu0 }
0x13d2   :  { %1874 = vpow2.f32 %v1532_v59 }
0x13dd   :  { %v1873_v58 = vpop.eup %1872 }
0x13de   :  { %1163 = vrot.lane.b32.xlu0 %v1873_v58, %s1883_s23 }
0x13df   :  { %v1875_v12 = vpop.eup %1874 }
0x13e0   :  { %v1157_v11 = vadd.f32 1.0, %v1875_v12 }
0x13e2   :  { %1876 = vrcp.f32 %v1157_v11 }
0x13ef   :  { %v1877_v47 = vpop.eup %1876 }
0x13f0   :  { %v1161_v62 = vmul.f32 %v1877_v47, %v1036_v36 }
0x1450   :  { %v1164_v60 = vpop.permute.xlu0 %1163 }
0x1451   :  { %v1166_v61 = vmul.f32 %v1877_v47, %v1164_v60 }
0x1453   :  { %1168 = vrot.lane.b32.xlu1 %v1166_v61, %s1884_s24 }
0x14c5   :  { %v1169_v18 = vpop.permute.xlu1 %1168 }
0x14c6   :  { %v1171_v63 = vadd.f32 %v1169_v18, %v1161_v62 }
0x14c8   :  { %1878 = vtanh.f32 %v1171_v63 }
0x14d5   :  { %v1879_v4 = vpop.eup %1878 }
0x14d6   :  { %1174 = vrot.lane.b32.xlu0 %v1879_v4, %s1883_s23 }
0x1548   :  { %v1175_v5 = vpop.permute.xlu0 %1174 }
0x1549   :  { %v1177_v7 = vmul.f32 %v1877_v47, %v1175_v5 }
0x154b   :  { %v1178_v8 = vpack.c.bf16 %v1177_v7, %v1177_v7 }
0x154d   :  { %1185 = vrot.lane.b32.xlu1 %v1178_v8, %s1884_s24 }
0x15bf   :  { %v1186_v10 = vpop.permute.xlu1 %1185 }
0x15c0   :  { %1755 = vmatmul.mubr.msk.bf16.vlgmr.msra.gmra.mxu1 %vm169_vm3, %v1186_v10 }
0x15c1   :  { %1770 = vmatprep.mubr.msk.bf16.mxu1 %vm1881_vm2, %v1880_v1  ;;  %1767 = vmatpush3.bf16.msra.mxu1 %v1812_v16 }
0x15c2   :  { %1768 = vmatprep.subr.bf16.mxu1 %v1880_v1 }
0x15c5   :  { %1769 = vmatpush3.bf16.msra.mxu1 %v1813_v26 }
0x1680   :  { %v1236_v17 = vpop.f32.mrf.mxu1 }
0x1681   :  { %v1242_v20 = vadd.f32 %v1236_v17, %v1107_v49 }
0x1682   :  { %v1756_v21 = vpop.f32.mrf.mxu1 }
0x1683   :  { %v1250_v22 = vadd.f32 %v1540_v19, %v1242_v20 }
0x1684   :  { %v1239_v23 = vpop.f32.mrf.mxu1 }
0x1685   :  { %v1251_v24 = vmax.f32 %v1250_v22, 0.0 }
0x1686   :  { %v1757_v3 = vpop.f32.mrf.mxu1 }
0x1687   :  { %v1252_v25 = vpack.c.bf16 %v1251_v24, %v1251_v24 }
0x1689   :  { %1763 = vmatmul.mubr.msk.bf16.vlgmr.msra.gmra.mxu0 %vm169_vm3, %v1252_v25 }
0x168a   :  { %1778 = vmatprep.mubr.msk.bf16.mxu0 %vm1881_vm2, %v1880_v1  ;;  %1775 = vmatpush3.bf16.msra.mxu0 %v1814_v27 }
0x168b   :  { %1776 = vmatprep.subr.bf16.mxu0 %v1880_v1  ;;  %v1550_v1 = vld [vmem:[%s2230_s7 + $0x1] ss:$0 sm:$0xff] }
0x168e   :  { %1777 = vmatpush3.bf16.msra.mxu0 %v1815_v33 }
0x1749   :  { %v1313_v29 = vpop.f32.mrf.mxu0 }
0x174a   :  { %v1314_v30 = vadd.f32 %v1541_v28, %v1313_v29 }
0x174b   :  { %v1764_v6 = vpop.f32.mrf.mxu0 }
0x174c   :  { %v1319_v31 = vmax.f32 %v1314_v30, 0.0 }
0x174d   :  { %v1316_v32 = vpop.f32.mrf.mxu0 }
0x174e   :  { %v1320_v9 = vpack.c.bf16 %v1319_v31, %v1319_v31 }
0x174f   :  { %v1765_v14 = vpop.f32.mrf.mxu0 }
0x1750   :  { %1771 = vmatmul.mubr.msk.bf16.vlgmr.msra.gmra.mxu1 %vm169_vm3, %v1320_v9 }
0x1810   :  { %v1383_v34 = vpop.f32.mrf.mxu1 }
0x1811   :  { %v1384_v35 = vadd.f32 %v1550_v1, %v1383_v34 }
0x1812   :  { %v1772_v36 = vpop.f32.mrf.mxu1 }
0x1813   :  { %v1389_v37 = vmax.f32 %v1384_v35, 0.0 }
0x1814   :  { %v1386_v38 = vpop.f32.mrf.mxu1 }
0x1815   :  { %v1390_v39 = vpack.c.bf16 %v1389_v37, %v1389_v37 }
0x1816   :  { %v1773_v40 = vpop.f32.mrf.mxu1 }
0x1817   :  { %1779 = vmatmul.mubr.msk.bf16.vlgmr.msra.gmra.mxu0 %vm169_vm3, %v1390_v39 }
0x18d7   :  { %v1451_v42 = vpop.f32.mrf.mxu0 }
0x18d8   :  { %v1452_v43 = vadd.f32 %v1554_v41, %v1451_v42 }
0x18d9   :  { %v1780_v44 = vpop.f32.mrf.mxu0 }
0x18da   :  { %1457 = vst [vmem:[%s2232_s10] sm:$0xff] %v1452_v43 }
0x18db   :  { %v1454_v45 = vpop.f32.mrf.mxu0 }
0x18dd   :  { %v1781_v46 = vpop.f32.mrf.mxu0 }

</bundles_post_ra>
